<compile_context>
chip_gen: v6e
topology: v6e:2x2x1
jax: 0.10.0
libtpu: 0.0.40
codegen_flags: <defaults>
</compile_context>

<pallas_src>
import jax
import jax.numpy as jnp
from jax.experimental import pallas as pl
from jax.experimental.pallas import tpu as pltpu

EPS = 0.1
REG_LAMBDA = 0.3
_NEG = -1e30  # finite "minus infinity": keeps the online-max rescale NaN-free


def _round_up(a, b):
    return (a + b - 1) // b * b


def _cdiv(a, b):
    return (a + b - 1) // b


def _vmem_capacity_bytes():
    try:
        cap = int(pltpu.get_tpu_info().vmem_capacity_bytes)
        if cap > 0:
            return cap
    except Exception:
        pass
    return 64 * 1024 * 1024  # conservative default (v7x per-TensorCore VMEM)


def _choose_tiling(N, C, in_itemsize, tile_shape=None):
    """Pick (TM, TC, vmem_limit_bytes) from the problem size and the chip."""
    vmem_cap = _vmem_capacity_bytes()
    # ~48 MiB on 64 MiB v7x, ~96 MiB on 128 MiB v5e/v6e; headroom for Mosaic.
    vmem_limit = max(4 << 20, min(int(vmem_cap * 0.75), vmem_cap - (8 << 20)))
    budget = int(vmem_limit * 0.8)

    n8 = _round_up(max(N, 1), 8)

    if tile_shape is not None:  # test/tuning override
        TM, TC = tile_shape
        TM = min(_round_up(TM, 8), n8)
        TC = C if TC >= C else _round_up(TC, 128)
        return TM, TC, vmem_limit

    # per (row, class) element: double-buffered input + ~4 live f32 temporaries
    bytes_per_cell = 2 * in_itemsize + 4 * 4

    if 8 * C * bytes_per_cell <= budget:
        # Whole class dim in one block; pick TM for ~2 MiB of logits/buffer.
        TC = C
        tm_target = _round_up(max(1, (2 << 20) // (C * in_itemsize)), 8)
        tm_cap = max(8, (budget // (C * bytes_per_cell)) // 8 * 8)
        TM = max(8, min(tm_target, tm_cap, n8))
    else:
        # Vocab-scale C: tile classes too (online-max accumulators in scratch).
        TM = min(256, n8)
        tc_cap = max(128, (budget // (TM * bytes_per_cell)) // 128 * 128)
        TC = min(_round_up(C, 128), tc_cap, 8192)

    # v7x has 2 TensorCores: make sure the "parallel" row axis has >= 2 tiles
    # when the batch allows it (one extra grid step on 1-TC chips: negligible).
    if _cdiv(N, TM) < 2 and N > 8:
        TM = max(8, _round_up(_cdiv(N, 2), 8))

    return TM, TC, vmem_limit


def _make_kernel(N, C, TM, TC, num_c_tiles):
    """Per (row-tile, class-tile) kernel; true N, C baked in at trace time."""
    ragged_rows = (N % TM) != 0
    ragged_cols = (C % TC) != 0
    inv_cm1 = 1.0 / (C - 1)

    def kernel(tgt_ref, x_ref, out_ref,
               m_acc, s_acc, d_acc, ez_acc, xs_acc, xt_acc):
        i = pl.program_id(0)   # row-tile index  ("parallel")
        c = pl.program_id(1)   # class-tile index ("arbitrary", innermost)

        @pl.when(c == 0)
        def _init():
            m_acc[...] = jnp.full_like(m_acc, _NEG)
            s_acc[...] = jnp.zeros_like(s_acc)
            d_acc[...] = jnp.zeros_like(d_acc)
            ez_acc[...] = jnp.zeros_like(ez_acc)
            xs_acc[...] = jnp.zeros_like(xs_acc)
            xt_acc[...] = jnp.zeros_like(xt_acc)

        x = x_ref[...].astype(jnp.float32)          # (TM, TC), cast in-kernel
        tgt = tgt_ref[...]                          # (TM, 1) int32 labels
        col = c * TC + jax.lax.broadcasted_iota(jnp.int32, (1, TC), 1)
        is_t = col == tgt                           # (TM, TC), <=1 True / row

        # Neutralize ragged edges (trace-time gated; costs 1 select/elem only
        # when the shape actually has a ragged edge).
        if ragged_rows:
            rid = i * TM + jax.lax.broadcasted_iota(jnp.int32, (TM, 1), 0)
            x = jnp.where(rid < N, x, 0.0)          # garbage rows -> 0 (finite)
        if ragged_cols:
            col_ok = col < C
            x_for_sum = jnp.where(col_ok, x, 0.0)   # neutral for sum(x)
            x = jnp.where(col_ok, x, _NEG)          # neutral for max / exp
        else:
            x_for_sum = x

        # ---- online-max update of the six per-row statistics ---------------
        m_old = m_acc[...]
        m_new = jnp.maximum(m_old, jnp.max(x, axis=-1, keepdims=True))
        delta = m_old - m_new                        # <= 0
        alpha = jnp.exp(delta)

        z = x - m_new
        e = jnp.exp(z)                               # the only O(TM*TC) exp
        e_nt = jnp.where(is_t, 0.0, e)               # non-target exponentials

        s_loc = jnp.sum(e, axis=-1, keepdims=True)           # sum e
        d_loc = jnp.sum(e_nt, axis=-1, keepdims=True)         # sum' e
        ez_loc = jnp.sum(e_nt * z, axis=-1, keepdims=True)    # sum' e*z
        xs_loc = jnp.sum(x_for_sum, axis=-1, keepdims=True)   # sum x
        xt_loc = jnp.sum(jnp.where(is_t, x, 0.0), axis=-1, keepdims=True)

        d_old = d_acc[...]
        # sum' e^{x-M}(x-M) rescale needs the old denom: a*(ez + delta*d_old)
        ez_acc[...] = alpha * (ez_acc[...] + delta * d_old) + ez_loc
        d_acc[...] = alpha * d_old + d_loc
        s_acc[...] = alpha * s_acc[...] + s_loc
        xs_acc[...] = xs_acc[...] + xs_loc
        xt_acc[...] = xt_acc[...] + xt_loc
        m_acc[...] = m_new

        # ---- finalize on the last class tile --------------------------------
        @pl.when(c == num_c_tiles - 1)
        def _finalize():
            m1 = m_acc[...]
            lse1 = jnp.log(s_acc[...])
            x_sum = xs_acc[...]
            x_t = xt_acc[...]
            denom = d_acc[...]
            ez = ez_acc[...]

            # label smoothing: -sum(log_softmax(x)) = C*(m1+lse1) - sum(x)
            ls_rows = C * (m1 + lse1) - x_sum
            # cross entropy of log_preds vs target (log_softmax idempotent)
            ce_rows = (m1 + lse1) - x_t
            # large-margin regularizer, fully collapsed to row statistics
            reg_rows = 0.5 * (ez / denom
                              - (x_sum - x_t - (C - 1) * m1) * inv_cm1)

            if ragged_rows:
                rid = i * TM + jax.lax.broadcasted_iota(jnp.int32, (TM, 1), 0)
                valid = (rid < N).astype(jnp.float32)
                ls_rows = ls_rows * valid
                ce_rows = ce_rows * valid
                reg_rows = reg_rows * valid

            ls_p = jnp.sum(ls_rows)
            ce_p = jnp.sum(ce_rows)
            reg_p = jnp.sum(reg_rows)

            # lane-dense (8, 128) partial block: row 0 = ls, 1 = ce, 2 = reg
            row8 = jax.lax.broadcasted_iota(jnp.int32, (8, 128), 0)
            out_ref[...] = jnp.where(
                row8 == 0, ls_p,
                jnp.where(row8 == 1, ce_p, jnp.where(row8 == 2, reg_p, 0.0)))

    return kernel


def label_smoothing_ce_with_lmsce(output, target, eps=EPS,
                                  reg_lambda=REG_LAMBDA, tile_shape=None):
    """Forward of LabelSmoothingCrossEntropyWithLMSCE (reduction='mean')."""
    N, C = output.shape
    in_itemsize = jnp.dtype(output.dtype).itemsize
    TM, TC, vmem_limit = _choose_tiling(N, C, in_itemsize, tile_shape)

    num_row_tiles = _cdiv(N, TM)
    num_c_tiles = _cdiv(C, TC)

    tgt2d = target.astype(jnp.int32).reshape(N, 1)

    out = pl.pallas_call(
        _make_kernel(N, C, TM, TC, num_c_tiles),
        out_shape=jax.ShapeDtypeStruct((num_row_tiles * 8, 128), jnp.float32),
        grid_spec=pltpu.PrefetchScalarGridSpec(
            num_scalar_prefetch=0,
            grid=(num_row_tiles, num_c_tiles),
            in_specs=[
                pl.BlockSpec((TM, 1), lambda i, c: (i, 0)),
                pl.BlockSpec((TM, TC), lambda i, c: (i, c)),
            ],
            out_specs=pl.BlockSpec((8, 128), lambda i, c: (i, 0)),
            scratch_shapes=[pltpu.VMEM((TM, 1), jnp.float32)] * 6,
        ),
        compiler_params=pltpu.CompilerParams(
            dimension_semantics=("parallel", "arbitrary"),
            vmem_limit_bytes=int(vmem_limit),
        ),
    )(tgt2d, output)

    # --- tiny glue: cross-tile sums, mean over N, scalar combination --------
    parts = out.reshape(num_row_tiles, 8, 128)
    ls_mean = jnp.sum(parts[:, 0, 0]) / N
    ce_mean = jnp.sum(parts[:, 1, 0]) / N
    reg_mean = jnp.sum(parts[:, 2, 0]) / N
    lmsce = ce_mean + reg_lambda * reg_mean
    return ls_mean * eps / C + (1.0 - eps) * lmsce


def _reference(output, target, eps=EPS, reg_lambda=REG_LAMBDA):
    """Pure-JAX reference mirroring the PyTorch module, for sanity checks."""
    N, C = output.shape
    log_preds = jax.nn.log_softmax(output, axis=-1)
    ls = jnp.mean(-jnp.sum(log_preds, axis=-1))
    mask = jax.nn.one_hot(target, C, dtype=jnp.float32)
    lsm2 = jax.nn.log_softmax(log_preds, axis=-1)
    ce = jnp.mean(-jnp.sum(lsm2 * mask, axis=-1))
    X = log_preds - 1.0e6 * mask
    reg = 0.5 * jnp.sum(
        (jax.nn.softmax(X, axis=-1) - 1.0 / (C - 1))
        * jax.nn.log_softmax(X, axis=-1)
        * (1.0 - mask),
        axis=-1,
    )
    return ls * eps / C + (1.0 - eps) * (ce + reg_lambda * jnp.mean(reg))


if __name__ == "__main__":
    key = jax.random.PRNGKey(0)

    # 1) aligned single-block case, 2) ragged N with 2 "parallel" row tiles,
    # 3) forced small tiles to exercise the class-axis online accumulation
    #    (2 class tiles, ragged C) and ragged rows at once.
    cases = [
        ((8, 32), None),
        ((20, 48), None),
        ((20, 200), (16, 128)),
    ]
    for (N, C), hint in cases:
        key, k1, k2 = jax.random.split(key, 3)
        output = jax.random.normal(k1, (N, C), dtype=jnp.float32)
        target = jax.random.randint(k2, (N,), 0, C, dtype=jnp.int32)

        loss = jax.block_until_ready(
            label_smoothing_ce_with_lmsce(output, target, tile_shape=hint))
        ref = _reference(output, target)
        assert jnp.allclose(loss, ref, rtol=1e-5, atol=5e-5), (N, C, loss, ref)

    print("KERNEL_OK")
</pallas_src>

<mosaic_0001>
module attributes {stable_mosaic.version = 11 : i64} {
  func.func @kernel(%arg0: i32, %arg1: i32, %arg2: memref<8x1xi32, #tpu.memory_space<vmem>>, %arg3: memref<8x32xf32, #tpu.memory_space<vmem>>, %arg4: memref<8x128xf32, #tpu.memory_space<vmem>>, %arg5: memref<8x1xf32, #tpu.memory_space<vmem>>, %arg6: memref<8x1xf32, #tpu.memory_space<vmem>>, %arg7: memref<8x1xf32, #tpu.memory_space<vmem>>, %arg8: memref<8x1xf32, #tpu.memory_space<vmem>>, %arg9: memref<8x1xf32, #tpu.memory_space<vmem>>, %arg10: memref<8x1xf32, #tpu.memory_space<vmem>>) attributes {dimension_semantics = [#tpu.dimension_semantics<parallel>, #tpu.dimension_semantics<arbitrary>], iteration_bounds = array<i64: 1, 1>, scalar_prefetch = 0 : i64, scratch_operands = 6 : i64, tpu.core_type = #tpu.core_type<tc>, window_params = [{transform_indices = @transform_0, window_bounds = array<i64: 8, 1>}, {transform_indices = @transform_1, window_bounds = array<i64: 8, 32>}, {transform_indices = @transform_2, window_bounds = array<i64: 8, 128>}]} {
    %c0_i32 = arith.constant 0 : i32
    %0 = arith.cmpi eq, %arg1, %c0_i32 : i32
    %1 = arith.extui %0 : i1 to i32
    %c0_i32_0 = arith.constant 0 : i32
    %2 = arith.cmpi ne, %1, %c0_i32_0 : i32
    scf.if %2 {
      %cst_37 = arith.constant -1.000000e+30 : f32
      %60 = vector.broadcast %cst_37 : f32 to vector<8x1xf32>
      %c0_38 = arith.constant 0 : index
      %c0_39 = arith.constant 0 : index
      %61 = vector.load %arg5[%c0_38, %c0_39] : memref<8x1xf32, #tpu.memory_space<vmem>>, vector<8x1xf32>
      tpu.vector_store %arg5[%c0_38, %c0_39], %60 {strides = array<i32>} : memref<8x1xf32, #tpu.memory_space<vmem>>, vector<8x1xf32>,
      %cst_40 = arith.constant 0.000000e+00 : f32
      %62 = vector.broadcast %cst_40 : f32 to vector<8x1xf32>
      %c0_41 = arith.constant 0 : index
      %c0_42 = arith.constant 0 : index
      %63 = vector.load %arg6[%c0_41, %c0_42] : memref<8x1xf32, #tpu.memory_space<vmem>>, vector<8x1xf32>
      tpu.vector_store %arg6[%c0_41, %c0_42], %62 {strides = array<i32>} : memref<8x1xf32, #tpu.memory_space<vmem>>, vector<8x1xf32>,
      %cst_43 = arith.constant 0.000000e+00 : f32
      %64 = vector.broadcast %cst_43 : f32 to vector<8x1xf32>
      %c0_44 = arith.constant 0 : index
      %c0_45 = arith.constant 0 : index
      %65 = vector.load %arg7[%c0_44, %c0_45] : memref<8x1xf32, #tpu.memory_space<vmem>>, vector<8x1xf32>
      tpu.vector_store %arg7[%c0_44, %c0_45], %64 {strides = array<i32>} : memref<8x1xf32, #tpu.memory_space<vmem>>, vector<8x1xf32>,
      %cst_46 = arith.constant 0.000000e+00 : f32
      %66 = vector.broadcast %cst_46 : f32 to vector<8x1xf32>
      %c0_47 = arith.constant 0 : index
      %c0_48 = arith.constant 0 : index
      %67 = vector.load %arg8[%c0_47, %c0_48] : memref<8x1xf32, #tpu.memory_space<vmem>>, vector<8x1xf32>
      tpu.vector_store %arg8[%c0_47, %c0_48], %66 {strides = array<i32>} : memref<8x1xf32, #tpu.memory_space<vmem>>, vector<8x1xf32>,
      %cst_49 = arith.constant 0.000000e+00 : f32
      %68 = vector.broadcast %cst_49 : f32 to vector<8x1xf32>
      %c0_50 = arith.constant 0 : index
      %c0_51 = arith.constant 0 : index
      %69 = vector.load %arg9[%c0_50, %c0_51] : memref<8x1xf32, #tpu.memory_space<vmem>>, vector<8x1xf32>
      tpu.vector_store %arg9[%c0_50, %c0_51], %68 {strides = array<i32>} : memref<8x1xf32, #tpu.memory_space<vmem>>, vector<8x1xf32>,
      %cst_52 = arith.constant 0.000000e+00 : f32
      %70 = vector.broadcast %cst_52 : f32 to vector<8x1xf32>
      %c0_53 = arith.constant 0 : index
      %c0_54 = arith.constant 0 : index
      %71 = vector.load %arg10[%c0_53, %c0_54] : memref<8x1xf32, #tpu.memory_space<vmem>>, vector<8x1xf32>
      tpu.vector_store %arg10[%c0_53, %c0_54], %70 {strides = array<i32>} : memref<8x1xf32, #tpu.memory_space<vmem>>, vector<8x1xf32>,
    } else {
    }
    %c0 = arith.constant 0 : index
    %c0_1 = arith.constant 0 : index
    %3 = vector.load %arg3[%c0, %c0_1] : memref<8x32xf32, #tpu.memory_space<vmem>>, vector<8x32xf32>
    %c0_2 = arith.constant 0 : index
    %c0_3 = arith.constant 0 : index
    %4 = vector.load %arg2[%c0_2, %c0_3] : memref<8x1xi32, #tpu.memory_space<vmem>>, vector<8x1xi32>
    %c32_i32 = arith.constant 32 : i32
    %5 = arith.muli %arg1, %c32_i32 : i32
    %6 = tpu.iota {dimensions = array<i32: 1>} : vector<1x32xi32>
    %7 = vector.broadcast %5 : i32 to vector<1x32xi32>
    %8 = arith.addi %7, %6 : vector<1x32xi32>
    %9 = vector.broadcast %8 : vector<1x32xi32> to vector<8x32xi32>
    %10 = vector.broadcast %4 : vector<8x1xi32> to vector<8x32xi32>
    %11 = arith.cmpi eq, %9, %10 : vector<8x32xi32>
    %c0_4 = arith.constant 0 : index
    %c0_5 = arith.constant 0 : index
    %12 = vector.load %arg5[%c0_4, %c0_5] : memref<8x1xf32, #tpu.memory_space<vmem>>, vector<8x1xf32>
    %cst = arith.constant dense<0xFF800000> : vector<8xf32>
    %13 = vector.multi_reduction <maximumf>, %3, %cst [1] : vector<8x32xf32> to vector<8xf32>
    %14 = vector.shape_cast %13 : vector<8xf32> to vector<8x1xf32>
    %15 = arith.maximumf %12, %14 : vector<8x1xf32>
    %16 = arith.subf %12, %15 : vector<8x1xf32>
    %17 = math.exp %16 : vector<8x1xf32>
    %18 = vector.broadcast %15 : vector<8x1xf32> to vector<8x32xf32>
    %19 = arith.subf %3, %18 : vector<8x32xf32>
    %20 = math.exp %19 : vector<8x32xf32>
    %cst_6 = arith.constant 0.000000e+00 : f32
    %21 = vector.broadcast %cst_6 : f32 to vector<8x32xf32>
    %22 = arith.select %11, %21, %20 : vector<8x32xi1>, vector<8x32xf32>
    %cst_7 = arith.constant dense<0.000000e+00> : vector<8xf32>
    %23 = vector.multi_reduction <add>, %20, %cst_7 [1] : vector<8x32xf32> to vector<8xf32>
    %24 = vector.shape_cast %23 : vector<8xf32> to vector<8x1xf32>
    %cst_8 = arith.constant dense<0.000000e+00> : vector<8xf32>
    %25 = vector.multi_reduction <add>, %22, %cst_8 [1] : vector<8x32xf32> to vector<8xf32>
    %26 = vector.shape_cast %25 : vector<8xf32> to vector<8x1xf32>
    %27 = arith.mulf %22, %19 : vector<8x32xf32>
    %cst_9 = arith.constant dense<0.000000e+00> : vector<8xf32>
    %28 = vector.multi_reduction <add>, %27, %cst_9 [1] : vector<8x32xf32> to vector<8xf32>
    %29 = vector.shape_cast %28 : vector<8xf32> to vector<8x1xf32>
    %cst_10 = arith.constant dense<0.000000e+00> : vector<8xf32>
    %30 = vector.multi_reduction <add>, %3, %cst_10 [1] : vector<8x32xf32> to vector<8xf32>
    %31 = vector.shape_cast %30 : vector<8xf32> to vector<8x1xf32>
    %cst_11 = arith.constant 0.000000e+00 : f32
    %32 = vector.broadcast %cst_11 : f32 to vector<8x32xf32>
    %33 = arith.select %11, %3, %32 : vector<8x32xi1>, vector<8x32xf32>
    %cst_12 = arith.constant dense<0.000000e+00> : vector<8xf32>
    %34 = vector.multi_reduction <add>, %33, %cst_12 [1] : vector<8x32xf32> to vector<8xf32>
    %35 = vector.shape_cast %34 : vector<8xf32> to vector<8x1xf32>
    %c0_13 = arith.constant 0 : index
    %c0_14 = arith.constant 0 : index
    %36 = vector.load %arg7[%c0_13, %c0_14] : memref<8x1xf32, #tpu.memory_space<vmem>>, vector<8x1xf32>
    %c0_15 = arith.constant 0 : index
    %c0_16 = arith.constant 0 : index
    %37 = vector.load %arg8[%c0_15, %c0_16] : memref<8x1xf32, #tpu.memory_space<vmem>>, vector<8x1xf32>
    %38 = arith.mulf %16, %36 : vector<8x1xf32>
    %39 = arith.addf %37, %38 : vector<8x1xf32>
    %40 = arith.mulf %17, %39 : vector<8x1xf32>
    %41 = arith.addf %40, %29 : vector<8x1xf32>
    %c0_17 = arith.constant 0 : index
    %c0_18 = arith.constant 0 : index
    %42 = vector.load %arg8[%c0_17, %c0_18] : memref<8x1xf32, #tpu.memory_space<vmem>>, vector<8x1xf32>
    tpu.vector_store %arg8[%c0_17, %c0_18], %41 {strides = array<i32>} : memref<8x1xf32, #tpu.memory_space<vmem>>, vector<8x1xf32>,
    %43 = arith.mulf %17, %36 : vector<8x1xf32>
    %44 = arith.addf %43, %26 : vector<8x1xf32>
    %c0_19 = arith.constant 0 : index
    %c0_20 = arith.constant 0 : index
    %45 = vector.load %arg7[%c0_19, %c0_20] : memref<8x1xf32, #tpu.memory_space<vmem>>, vector<8x1xf32>
    tpu.vector_store %arg7[%c0_19, %c0_20], %44 {strides = array<i32>} : memref<8x1xf32, #tpu.memory_space<vmem>>, vector<8x1xf32>,
    %c0_21 = arith.constant 0 : index
    %c0_22 = arith.constant 0 : index
    %46 = vector.load %arg6[%c0_21, %c0_22] : memref<8x1xf32, #tpu.memory_space<vmem>>, vector<8x1xf32>
    %47 = arith.mulf %17, %46 : vector<8x1xf32>
    %48 = arith.addf %47, %24 : vector<8x1xf32>
    %c0_23 = arith.constant 0 : index
    %c0_24 = arith.constant 0 : index
    %49 = vector.load %arg6[%c0_23, %c0_24] : memref<8x1xf32, #tpu.memory_space<vmem>>, vector<8x1xf32>
    tpu.vector_store %arg6[%c0_23, %c0_24], %48 {strides = array<i32>} : memref<8x1xf32, #tpu.memory_space<vmem>>, vector<8x1xf32>,
    %c0_25 = arith.constant 0 : index
    %c0_26 = arith.constant 0 : index
    %50 = vector.load %arg9[%c0_25, %c0_26] : memref<8x1xf32, #tpu.memory_space<vmem>>, vector<8x1xf32>
    %51 = arith.addf %50, %31 : vector<8x1xf32>
    %c0_27 = arith.constant 0 : index
    %c0_28 = arith.constant 0 : index
    %52 = vector.load %arg9[%c0_27, %c0_28] : memref<8x1xf32, #tpu.memory_space<vmem>>, vector<8x1xf32>
    tpu.vector_store %arg9[%c0_27, %c0_28], %51 {strides = array<i32>} : memref<8x1xf32, #tpu.memory_space<vmem>>, vector<8x1xf32>,
    %c0_29 = arith.constant 0 : index
    %c0_30 = arith.constant 0 : index
    %53 = vector.load %arg10[%c0_29, %c0_30] : memref<8x1xf32, #tpu.memory_space<vmem>>, vector<8x1xf32>
    %54 = arith.addf %53, %35 : vector<8x1xf32>
    %c0_31 = arith.constant 0 : index
    %c0_32 = arith.constant 0 : index
    %55 = vector.load %arg10[%c0_31, %c0_32] : memref<8x1xf32, #tpu.memory_space<vmem>>, vector<8x1xf32>
    tpu.vector_store %arg10[%c0_31, %c0_32], %54 {strides = array<i32>} : memref<8x1xf32, #tpu.memory_space<vmem>>, vector<8x1xf32>,
    %c0_33 = arith.constant 0 : index
    %c0_34 = arith.constant 0 : index
    %56 = vector.load %arg5[%c0_33, %c0_34] : memref<8x1xf32, #tpu.memory_space<vmem>>, vector<8x1xf32>
    tpu.vector_store %arg5[%c0_33, %c0_34], %15 {strides = array<i32>} : memref<8x1xf32, #tpu.memory_space<vmem>>, vector<8x1xf32>,
    %c0_i32_35 = arith.constant 0 : i32
    %57 = arith.cmpi eq, %arg1, %c0_i32_35 : i32
    %58 = arith.extui %57 : i1 to i32
    %c0_i32_36 = arith.constant 0 : i32
    %59 = arith.cmpi ne, %58, %c0_i32_36 : i32
    scf.if %59 {
      %c0_37 = arith.constant 0 : index
      %c0_38 = arith.constant 0 : index
      %60 = vector.load %arg5[%c0_37, %c0_38] : memref<8x1xf32, #tpu.memory_space<vmem>>, vector<8x1xf32>
      %c0_39 = arith.constant 0 : index
      %c0_40 = arith.constant 0 : index
      %61 = vector.load %arg6[%c0_39, %c0_40] : memref<8x1xf32, #tpu.memory_space<vmem>>, vector<8x1xf32>
      %62 = math.log %61 : vector<8x1xf32>
      %c0_41 = arith.constant 0 : index
      %c0_42 = arith.constant 0 : index
      %63 = vector.load %arg9[%c0_41, %c0_42] : memref<8x1xf32, #tpu.memory_space<vmem>>, vector<8x1xf32>
      %c0_43 = arith.constant 0 : index
      %c0_44 = arith.constant 0 : index
      %64 = vector.load %arg10[%c0_43, %c0_44] : memref<8x1xf32, #tpu.memory_space<vmem>>, vector<8x1xf32>
      %c0_45 = arith.constant 0 : index
      %c0_46 = arith.constant 0 : index
      %65 = vector.load %arg7[%c0_45, %c0_46] : memref<8x1xf32, #tpu.memory_space<vmem>>, vector<8x1xf32>
      %c0_47 = arith.constant 0 : index
      %c0_48 = arith.constant 0 : index
      %66 = vector.load %arg8[%c0_47, %c0_48] : memref<8x1xf32, #tpu.memory_space<vmem>>, vector<8x1xf32>
      %67 = arith.addf %60, %62 : vector<8x1xf32>
      %cst_49 = arith.constant 3.200000e+01 : f32
      %68 = vector.broadcast %cst_49 : f32 to vector<8x1xf32>
      %69 = arith.mulf %68, %67 : vector<8x1xf32>
      %70 = arith.subf %69, %63 : vector<8x1xf32>
      %71 = arith.addf %60, %62 : vector<8x1xf32>
      %72 = arith.subf %71, %64 : vector<8x1xf32>
      %73 = arith.divf %66, %65 : vector<8x1xf32>
      %74 = arith.subf %63, %64 : vector<8x1xf32>
      %cst_50 = arith.constant 3.100000e+01 : f32
      %75 = vector.broadcast %cst_50 : f32 to vector<8x1xf32>
      %76 = arith.mulf %75, %60 : vector<8x1xf32>
      %77 = arith.subf %74, %76 : vector<8x1xf32>
      %cst_51 = arith.constant 0.0322580636 : f32
      %78 = vector.broadcast %cst_51 : f32 to vector<8x1xf32>
      %79 = arith.mulf %77, %78 : vector<8x1xf32>
      %80 = arith.subf %73, %79 : vector<8x1xf32>
      %cst_52 = arith.constant 5.000000e-01 : f32
      %81 = vector.broadcast %cst_52 : f32 to vector<8x1xf32>
      %82 = arith.mulf %81, %80 : vector<8x1xf32>
      %83 = vector.shape_cast %70 : vector<8x1xf32> to vector<1x8x1xf32>
      %cst_53 = arith.constant dense<0.000000e+00> : vector<1xf32>
      %84 = vector.multi_reduction <add>, %83, %cst_53 [1, 2] : vector<1x8x1xf32> to vector<1xf32>
      %85 = vector.shape_cast %84 : vector<1xf32> to vector<1x1x1xf32>
      %86 = vector.extract %85[0, 0, 0] : f32 from vector<1x1x1xf32>
      %87 = vector.shape_cast %72 : vector<8x1xf32> to vector<1x8x1xf32>
      %cst_54 = arith.constant dense<0.000000e+00> : vector<1xf32>
      %88 = vector.multi_reduction <add>, %87, %cst_54 [1, 2] : vector<1x8x1xf32> to vector<1xf32>
      %89 = vector.shape_cast %88 : vector<1xf32> to vector<1x1x1xf32>
      %90 = vector.extract %89[0, 0, 0] : f32 from vector<1x1x1xf32>
      %91 = vector.shape_cast %82 : vector<8x1xf32> to vector<1x8x1xf32>
      %cst_55 = arith.constant dense<0.000000e+00> : vector<1xf32>
      %92 = vector.multi_reduction <add>, %91, %cst_55 [1, 2] : vector<1x8x1xf32> to vector<1xf32>
      %93 = vector.shape_cast %92 : vector<1xf32> to vector<1x1x1xf32>
      %94 = vector.extract %93[0, 0, 0] : f32 from vector<1x1x1xf32>
      %95 = tpu.iota {dimensions = array<i32: 0>} : vector<8x128xi32>
      %c0_i32_56 = arith.constant 0 : i32
      %96 = vector.broadcast %c0_i32_56 : i32 to vector<8x128xi32>
      %97 = arith.cmpi eq, %95, %96 : vector<8x128xi32>
      %c1_i32 = arith.constant 1 : i32
      %98 = vector.broadcast %c1_i32 : i32 to vector<8x128xi32>
      %99 = arith.cmpi eq, %95, %98 : vector<8x128xi32>
      %c2_i32 = arith.constant 2 : i32
      %100 = vector.broadcast %c2_i32 : i32 to vector<8x128xi32>
      %101 = arith.cmpi eq, %95, %100 : vector<8x128xi32>
      %cst_57 = arith.constant 0.000000e+00 : f32
      %102 = vector.broadcast %94 : f32 to vector<8x128xf32>
      %103 = vector.broadcast %cst_57 : f32 to vector<8x128xf32>
      %104 = arith.select %101, %102, %103 : vector<8x128xi1>, vector<8x128xf32>
      %105 = vector.broadcast %90 : f32 to vector<8x128xf32>
      %106 = arith.select %99, %105, %104 : vector<8x128xi1>, vector<8x128xf32>
      %107 = vector.broadcast %86 : f32 to vector<8x128xf32>
      %108 = arith.select %97, %107, %106 : vector<8x128xi1>, vector<8x128xf32>
      %c0_58 = arith.constant 0 : index
      %c0_59 = arith.constant 0 : index
      %109 = vector.load %arg4[%c0_58, %c0_59] : memref<8x128xf32, #tpu.memory_space<vmem>>, vector<8x128xf32>
      tpu.vector_store %arg4[%c0_58, %c0_59], %108 {strides = array<i32>} : memref<8x128xf32, #tpu.memory_space<vmem>>, vector<8x128xf32>,
    } else {
    }
    return
  }
  func.func @transform_0(%arg0: i32, %arg1: i32) -> (i32, i32) {
    %c0_i32 = arith.constant 0 : i32
    %c0_i32_0 = arith.constant 0 : i32
    return %arg0, %c0_i32 : i32, i32
  }
  func.func @transform_1(%arg0: i32, %arg1: i32) -> (i32, i32) {
    %c0_i32 = arith.constant 0 : i32
    return %arg0, %arg1 : i32, i32
  }
  func.func @transform_2(%arg0: i32, %arg1: i32) -> (i32, i32) {
    %c0_i32 = arith.constant 0 : i32
    %c0_i32_0 = arith.constant 0 : i32
    return %arg0, %c0_i32 : i32, i32
  }
}

</mosaic_0001>

<bundles_post_ra>
// kernel: tpu_custom_call.1
= control target key start
LH: loop header
LB: loop body
LE: loop exit
PB: predicated region body
PF: predicated region fallthrough
CT: control target
= control target key end

     0   :  { %vm35_vm0 = vcmask 261120   ;;  %s263_s0 = inlined_call_operand.vmem [shape: s32[8,1], index: 0, kind: input, shape index: {}]   ;;  %s264_s1 = inlined_call_operand.vmem [shape: f32[8,32], index: 1, kind: input, shape index: {}]   ;;  %s265_s2 = inlined_call_operand.hbm [shape: f32[8,128], index: 2, kind: output, shape index: {}]  }
   0x1   :  { %v23_v0 = vld [vmem:[%s264_s1] sm:$0xff] }
   0x2   :  { %7 = vsyncpa [#allocation9], 0  ;;  %v36_v1 = vsel %vm35_vm0, %v23_v0, -inf  ;;  %vm16_vm1 = vcmask 7168   ;;  %v212_v2 = vmov -1e+30   ;;  %v26_v10 = vlaneseq }
   0x3   :  { %37 = vmax.xlane.f32.xlu0 %v36_v1  ;;  %17 = vst.msk [vmem:[#allocation2] sm:$0xff] %vm16_vm1, %v212_v2  ;;  %v213_v3 = vmov 0.0   ;;  %v214_v4 = vmov 0   ;;  %v24_v5 = vld [vmem:[%s263_s0] sm:$0xff]  ;;  %v62_v22 = vsel %vm35_vm0, %v23_v0, 0.0  ;;  %s215_s14 = smov [#allocation8]  }
   0x4   :  { %18 = vst.msk [vmem:[#allocation3] sm:$0xff] %vm16_vm1, %v213_v3  ;;  %19 = vst.msk [vmem:[#allocation4] sm:$0xff] %vm16_vm1, %v213_v3  ;;  %180 = vset.pattern.permute.xlu0 %v214_v4  ;;  %181 = vset.pattern.permute.xlu1 %v214_v4  ;;  %v27_v11 = vand.u32 127, %v26_v10  ;;  %s162_s15 = sshll.u32 %s215_s14, 4  ;;  %s163_s15 = int_to_ptr.vmem [resolvable:$true] %s162_s15 }
   0x5   :  { %20 = vst.msk [vmem:[#allocation5] sm:$0xff] %vm16_vm1, %v213_v3  ;;  %21 = vst.msk [vmem:[#allocation6] sm:$0xff] %vm16_vm1, %v213_v3  ;;  %31 = vperm.xlu1 %181, %v24_v5   ;;  %s190_s16 = scalar_lea.vmem %s163_s15, 128  ;;  %p195_p1 = scmp.lt.s32.totalorder %s163_s15, %s163_s15 }
   0x6   :  { %22 = vst.msk [vmem:[#allocation7] sm:$0xff] %vm16_vm1, %v213_v3  ;;  %p191_p0 = scmp.ne.s32.totalorder %s163_s15, %s190_s16  ;;  %p196_p2 = scmp.lt.s32.totalorder %s190_s16, %s190_s16 }
   0x8   :  { %p197_p3 = por %p196_p2, %p195_p1 }
   0xa   :  { %v34_v6 = vld [vmem:[#allocation2] sm:$0xff]  ;;  %p198_p4 = pnand %p197_p3, %p191_p0 }
   0xb   :  { %v80_v30 = vld [vmem:[#allocation3] sm:$0xff]  ;;  %v69_v34 = vld [vmem:[#allocation4] sm:$0xff] }
   0xc   :  { %v84_v39 = vld [vmem:[#allocation6] sm:$0xff]  ;;  %v70_v40 = vld [vmem:[#allocation5] sm:$0xff] }
   0xd   :  { %v87_v25 = vld [vmem:[#allocation7] sm:$0xff] }
  0x80   :  { %v32_v12 = vpop.permute.xlu1 %31 }
  0x81   :  { %vm33_vm2 = vcmp.eq.s32.totalorder %v27_v11, %v32_v12 }
  0x82   :  { %v65_v13 = vsel %vm33_vm2, %v23_v0, 0.0 }
  0x83   :  { %v66_v14 = vsel %vm35_vm0, %v65_v13, 0.0 }
  0x8c   :  { %v38_v7 = vpop.xlane.xlu0 %37 }
  0x8d   :  { %v39_v8 = vmax.f32 %v34_v6, %v38_v7 }
  0x8f   :  { %v40_v9 = vsub.f32 %v34_v6, %v39_v8  ;;  %90 = vst.msk [vmem:[#allocation2] sm:$0xff] %vm16_vm1, %v39_v8  ;;  %45 = vperm.xlu0 %180, %v39_v8  }
  0x91   :  { %v41_v28 = vmul.f32 1.442695, %v40_v9  ;;  %v71_v38 = vmul.f32 %v69_v34, %v40_v9 }
  0x93   :  { %v72_v43 = vadd.f32 %v71_v38, %v70_v40 }
  0x96   :  { %v94_v51 = vld [vmem:[#allocation2] sm:$0xff] }
  0x97   :  { %v109_v53 = vmul.f32 31.0, %v94_v51 }
  0xae   :  { %67 = vadd.xlane.f32.xlu0 %v66_v14 }
 0x10a   :  { %v46_v15 = vpop.permute.xlu0 %45 }
 0x10b   :  { %v48_v16 = vsub.f32 %v23_v0, %v46_v15 }
 0x10d   :  { %v49_v17 = vmul.f32 1.442695, %v48_v16 }
 0x10f   :  { %182 = vpow2.f32 %v49_v17 }
 0x110   :  { %184 = vpow2.f32 %v41_v28  ;;  %v145_v28 = vshrl.u32 %v26_v10, 7 }
 0x112   :  { %vm148_vm3 = vcmp.eq.s32.totalorder %v145_v28, 2  ;;  %vm147_vm4 = vcmp.eq.s32.totalorder %v145_v28, 1  ;;  %vm146_vm5 = vcmp.eq.s32.totalorder %v145_v28, 0 }
 0x11c   :  { %v183_v18 = vpop.eup %182 }
 0x11d   :  { %v52_v19 = vsel %vm35_vm0, %v183_v18, 0.0  ;;  %v51_v20 = vsel %vm33_vm2, 0.0, %v183_v18  ;;  %v185_v29 = vpop.eup %184 }
 0x11e   :  { %53 = vadd.xlane.f32.xlu1 %v52_v19  ;;  %v55_v21 = vsel %vm35_vm0, %v51_v20, 0.0  ;;  %v58_v23 = vmul.f32 %v51_v20, %v48_v16  ;;  %v81_v31 = vmul.f32 %v185_v29, %v80_v30  ;;  %v77_v35 = vmul.f32 %v185_v29, %v69_v34 }
 0x11f   :  { %v73_v45 = vmul.f32 %v185_v29, %v72_v43 }
 0x120   :  { %v59_v24 = vsel %vm35_vm0, %v58_v23, 0.0 }
 0x122   :  { %56 = vadd.xlane.f32.xlu1 %v55_v21 }
 0x126   :  { %63 = vadd.xlane.f32.xlu1 %v62_v22 }
 0x12a   :  { %60 = vadd.xlane.f32.xlu1 %v59_v24 }
 0x137   :  { %v68_v26 = vpop.xlane.xlu0 %67 }
 0x138   :  { %v88_v27 = vadd.f32 %v87_v25, %v68_v26 }
 0x13a   :  { %89 = vst.msk [vmem:[#allocation7] sm:$0xff] %vm16_vm1, %v88_v27 }
 0x141   :  { %v99_v49 = vld [vmem:[#allocation7] sm:$0xff] }
 0x1a7   :  { %v54_v32 = vpop.xlane.xlu1 %53 }
 0x1a8   :  { %v82_v33 = vadd.f32 %v81_v31, %v54_v32 }
 0x1aa   :  { %83 = vst.msk [vmem:[#allocation3] sm:$0xff] %vm16_vm1, %v82_v33 }
 0x1ab   :  { %v57_v36 = vpop.xlane.xlu1 %56 }
 0x1ac   :  { %v78_v37 = vadd.f32 %v77_v35, %v57_v36 }
 0x1ae   :  { %79 = vst.msk [vmem:[#allocation4] sm:$0xff] %vm16_vm1, %v78_v37 }
 0x1af   :  { %v64_v41 = vpop.xlane.xlu1 %63 }
 0x1b0   :  { %v85_v42 = vadd.f32 %v84_v39, %v64_v41 }
 0x1b1   :  { %v95_v44 = vld [vmem:[#allocation3] sm:$0xff] }
 0x1b2   :  { %86 = vst.msk [vmem:[#allocation6] sm:$0xff] %vm16_vm1, %v85_v42  ;;  %186 = vlog2.f32 %v95_v44 }
 0x1b3   :  { %v61_v46 = vpop.xlane.xlu1 %60 }
 0x1b4   :  { %v74_v47 = vadd.f32 %v73_v45, %v61_v46 }
 0x1b5   :  { %v100_v48 = vld [vmem:[#allocation4] sm:$0xff] }
 0x1b6   :  { %76 = vst.msk [vmem:[#allocation5] sm:$0xff] %vm16_vm1, %v74_v47  ;;  %188 = vrcp.f32 %v100_v48 }
 0x1b9   :  { %v98_v50 = vld [vmem:[#allocation6] sm:$0xff] }
 0x1ba   :  { %v108_v52 = vsub.f32 %v98_v50, %v99_v49 }
 0x1bc   :  { %v110_v56 = vsub.f32 %v108_v52, %v109_v53 }
 0x1bd   :  { %v101_v59 = vld [vmem:[#allocation5] sm:$0xff] }
 0x1be   :  { %v111_v63 = vmul.f32 0.032258064, %v110_v56 }
 0x1bf   :  { %v187_v54 = vpop.eup %186 }
 0x1c0   :  { %v97_v55 = vmul.f32 0.6931472, %v187_v54 }
 0x1c2   :  { %v102_v57 = vadd.f32 %v97_v55, %v94_v51 }
 0x1c3   :  { %v189_v58 = vpop.eup %188 }
 0x1c4   :  { %v105_v60 = vsub.f32 %v102_v57, %v99_v49  ;;  %v103_v61 = vmul.f32 32.0, %v102_v57  ;;  %v107_v62 = vmul.f32 %v189_v58, %v101_v59 }
 0x1c6   :  { %v124_v0 = vsel %vm16_vm1, %v105_v60, 0.0  ;;  %v104_v1 = vsub.f32 %v103_v61, %v98_v50  ;;  %v112_v2 = vsub.f32 %v107_v62, %v111_v63 }
 0x1c7   :  { %125 = vadd.xlane.f32.xlu1 %v124_v0 }
 0x1c8   :  { %v114_v3 = vsel %vm16_vm1, %v104_v1, 0.0  ;;  %v113_v4 = vmul.f32 0.5, %v112_v2 }
 0x1ca   :  { %v134_v5 = vsel %vm16_vm1, %v113_v4, 0.0 }
 0x1cb   :  { %115 = vadd.xlane.f32.xlu1 %v114_v3 }
 0x1cf   :  { %135 = vadd.xlane.f32.xlu1 %v134_v5 }
 0x250   :  { %v126_v6 = vpop.xlane.xlu1 %125 }
 0x251   :  { %v127_v7 = vrot.slane %v126_v6, 4 }
 0x253   :  { %v128_v8 = vadd.f32 %v127_v7, %v126_v6 }
 0x254   :  { %v116_v9 = vpop.xlane.xlu1 %115 }
 0x255   :  { %v129_v11 = vrot.slane %v128_v8, 2  ;;  %v117_v12 = vrot.slane %v116_v9, 4 }
 0x257   :  { %v118_v13 = vadd.f32 %v117_v12, %v116_v9  ;;  %v130_v15 = vadd.f32 %v129_v11, %v128_v8 }
 0x258   :  { %v136_v14 = vpop.xlane.xlu1 %135 }
 0x259   :  { %v119_v16 = vrot.slane %v118_v13, 2  ;;  %v137_v17 = vrot.slane %v136_v14, 4  ;;  %v131_v20 = vrot.slane %v130_v15, 1 }
 0x25b   :  { %v138_v18 = vadd.f32 %v137_v17, %v136_v14  ;;  %v120_v19 = vadd.f32 %v119_v16, %v118_v13  ;;  %v132_v25 = vadd.f32 %v131_v20, %v130_v15 }
 0x25d   :  { %v139_v21 = vrot.slane %v138_v18, 2  ;;  %v121_v22 = vrot.slane %v120_v19, 1 }
 0x25f   :  { %v140_v23 = vadd.f32 %v139_v21, %v138_v18  ;;  %v122_v24 = vadd.f32 %v121_v22, %v120_v19 }
 0x261   :  { %170 = vpush %v122_v24  ;;  %v141_v26 = vrot.slane %v140_v23, 1 }
 0x262   :  { %172 = vpush %v132_v25 }
 0x263   :  { %v142_v27 = vadd.f32 %v141_v26, %v140_v23 }
 0x265   :  { %174 = vpush %v142_v27 }
 0x292   :  { %s171_s0 = spop %170 }
 0x293   :  { %s173_s12 = spop %172  ;;  %v153_v32 = vstv %s171_s0 }
 0x294   :  { %v151_v30 = vstv %s173_s12 }
 0x296   :  { %s175_s13 = spop %174 }
 0x297   :  { %v149_v29 = vstv %s175_s13 }
 0x298   :  { %v150_v31 = vsel %vm148_vm3, %v149_v29, 0.0 }
 0x299   :  { %v152_v33 = vsel %vm147_vm4, %v151_v30, %v150_v31 }
 0x29a   :  { %v154_v34 = vsel %vm146_vm5, %v153_v32, %v152_v33 }
 0x29b   :  { %155 = vst [vmem:[#allocation8] sm:$0xff] %v154_v34 }
 0x29c   :  { %201 = shalt.err (!%p198_p4)
}
 0x29d   :  { %165 = dma.vmem_to_hbm [thread:$0]  %s163_s15, 128, %s265_s2, [#allocation9]  }
 0x29e   :  { %210 = dma.done.wait [#allocation9], 128  }
 0x29f   :  { %211 = vsyncadd [#allocation9], 4294967168 }
 0x2a0   :  { %169 = vsyncpa [#allocation9], 1 }

</bundles_post_ra>
